<compile_context>
chip_gen: v5e
topology: v5e:2x2
jax: 0.10.0
libtpu: 0.0.40
codegen_flags: <defaults>
</compile_context>

<pallas_src>
import functools

import numpy as np
import jax
import jax.numpy as jnp
from jax import lax
from jax.experimental import pallas as pl
from jax.experimental.pallas import tpu as pltpu

_LANES = 128
_CHUNK_ROWS = 512                         # in-kernel streaming chunk (256 KiB f32)
_VMEM_INPUT_BUDGET = 24 * 1024 * 1024     # input double-buffer budget
_VMEM_LIMIT_BYTES = 32 * 1024 * 1024      # <= scoped VMEM on v5e/v6e/v7x


# ----------------------------- kernel body ---------------------------------


def _partial_block(x_ref, i, *, sign, rows, tile_rows, need_mask):
    """(8, 128) partial sums of clamp(softplus(sign*x), 100) for this block."""

    def terms(xb, row0):
        xb = xb.astype(jnp.float32)                      # widen in-vreg (bf16 ok)
        z = -xb if sign < 0 else xb
        # stable softplus(z) = max(z, 0) + log1p(exp(-|z|))
        t = jnp.maximum(z, 0.0) + jnp.log1p(jnp.exp(-jnp.abs(z)))
        t = jnp.minimum(t, 100.0)                        # nn.BCELoss clamp
        if need_mask:
            # zero ragged-tail rows and blocks past this input's grid extent
            r = row0 + lax.broadcasted_iota(jnp.int32, t.shape, 0)
            t = jnp.where(r < rows, t, 0.0)
        return t

    if tile_rows % _CHUNK_ROWS == 0:
        # Large tile: stream it in 512-row chunks, accumulate in one vreg slab.
        nchunk = tile_rows // _CHUNK_ROWS

        def body(c, acc):
            r0 = pl.multiple_of(c * _CHUNK_ROWS, _CHUNK_ROWS)
            xc = x_ref[pl.ds(r0, _CHUNK_ROWS), :]
            t = terms(xc, i * tile_rows + r0)
            return acc + jnp.sum(t.reshape(_CHUNK_ROWS // 8, 8, _LANES), axis=0)

        return lax.fori_loop(0, nchunk, body,
                             jnp.zeros((8, _LANES), jnp.float32),
                             unroll=min(nchunk, 8))

    # Small full-array block (tile_rows <= 512).
    t = terms(x_ref[...], i * tile_rows)
    if tile_rows % 8 == 0:
        return jnp.sum(t.reshape(tile_rows // 8, 8, _LANES), axis=0)
    # Tiny unaligned block: one cross-sublane reduce, placed in row 0.
    col = jnp.sum(t, axis=0, keepdims=True)              # (1, 128)
    ridx = lax.broadcasted_iota(jnp.int32, (8, _LANES), 0)
    return jnp.where(ridx == 0, col, 0.0)


def _fused_kernel(*refs, params):
    out_ref = refs[-1]                                   # (8, 4*128) block
    i = pl.program_id(0)
    for k, prm in enumerate(params):
        p = _partial_block(refs[k], i, **prm)            # (8, 128)
        out_ref[:, k * _LANES:(k + 1) * _LANES] = p


# ----------------------------- host-side wrapper ----------------------------


def _as_rows128(x, sign):
    """Reshape to (rows, 128); a free bitcast when x.size % 128 == 0."""
    n = x.size
    flat = x.reshape(-1)
    rem = n % _LANES
    if rem:
        # Rare path (size not a multiple of 128): pad < 128 elements whose BCE
        # term is ~0 (softplus(-200) ~ 1e-87).  This is the only copying path.
        flat = jnp.concatenate(
            [flat, jnp.full((_LANES - rem,), -200.0 * sign, flat.dtype)])
    return flat.reshape(flat.size // _LANES, _LANES)


def _pick_max_tile_rows(row_counts, itemsizes):
    """Largest tile (rows) whose input double-buffers fit the VMEM budget."""
    max_rows = 16384
    while max_rows > _CHUNK_ROWS:
        need = sum(2 * min(r, max_rows) * _LANES * sz
                   for r, sz in zip(row_counts, itemsizes))
        if need <= _VMEM_INPUT_BUDGET:
            break
        max_rows //= 2
    # Megacore (v7x): make the biggest input span >= 2 grid steps.
    biggest = max(row_counts)
    if biggest >= 2048:
        max_rows = min(max_rows, -(-biggest // 2))
    return max_rows


def _tile_rows(rows, max_rows):
    """Per-input tile height: full array when small/aligned, else 512-aligned."""
    if rows <= max_rows and (rows <= _CHUNK_ROWS or rows % _CHUNK_ROWS == 0):
        return rows                                      # whole array, always legal
    return (min(rows, max_rows) // _CHUNK_ROWS) * _CHUNK_ROWS


@jax.jit
def two_level_bce_loss(l1_pos, l2_pos, l1_neg, l2_neg):
    """Equivalent of TwoLevelBCELoss.forward (returns a scalar)."""
    signs = (-1.0, -1.0, 1.0, 1.0)        # target=1 -> softplus(-x); target=0 -> softplus(+x)
    raw = (l1_pos, l2_pos, l1_neg, l2_neg)
    # True element counts for the per-tensor means (empty inputs would divide
    # by zero, matching PyTorch's NaN on empty BCELoss).
    counts = [float(np.prod(x.shape)) for x in raw]

    xs = [_as_rows128(x, s) for x, s in zip(raw, signs)]
    rows = [int(x.shape[0]) for x in xs]
    itemsizes = [x.dtype.itemsize for x in xs]

    max_rows = _pick_max_tile_rows(rows, itemsizes)
    tiles = [_tile_rows(r, max_rows) for r in rows]
    grids = [-(-r // t) for r, t in zip(rows, tiles)]
    grid = max(grids)

    params = tuple(
        dict(sign=s, rows=r, tile_rows=t,
             need_mask=(g < grid) or (r % t != 0))
        for s, r, t, g in zip(signs, rows, tiles, grids))

    def in_spec(t, g):
        if g == 1:
            index_map = lambda i: (0, 0)
        elif g == grid:
            index_map = lambda i: (i, 0)
        else:
            # Exhausted inputs clamp to their last block; the repeated block
            # index elides the DMA and the kernel masks its contribution to 0.
            index_map = lambda i, gk=g: (jnp.minimum(i, gk - 1), 0)
        return pl.BlockSpec((t, _LANES), index_map)

    in_bytes = sum(r * _LANES * sz for r, sz in zip(rows, itemsizes))
    out_bytes = grid * 8 * 4 * _LANES * 4
    n_total = sum(r * _LANES for r in rows)
    cost = pl.CostEstimate(flops=8 * n_total, transcendentals=2 * n_total,
                           bytes_accessed=in_bytes + out_bytes)

    partials = pl.pallas_call(
        functools.partial(_fused_kernel, params=params),
        out_shape=jax.ShapeDtypeStruct((grid * 8, 4 * _LANES), jnp.float32),
        grid=(grid,),
        in_specs=[in_spec(t, g) for t, g in zip(tiles, grids)],
        out_specs=pl.BlockSpec((8, 4 * _LANES), lambda i: (i, 0)),
        compiler_params=pltpu.CompilerParams(
            dimension_semantics=("parallel",),
            vmem_limit_bytes=_VMEM_LIMIT_BYTES),
        cost_estimate=cost,
    )(*xs)

    # Tiny tail reduction: per-input sums, then the four means, in one jit.
    per_input = jnp.sum(partials.reshape(grid * 8, 4, _LANES), axis=(0, 2))
    inv_n = jnp.asarray([1.0 / c for c in counts], jnp.float32)
    return jnp.sum(per_input * inv_n)


# ----------------------------- reference & demo -----------------------------


def _reference(l1_pos, l2_pos, l1_neg, l2_neg):
    """NumPy float64 reference matching nn.BCELoss semantics."""
    def bce_mean(x, target_one):
        x = np.asarray(x, np.float64)
        p = 1.0 / (1.0 + np.exp(-x))
        term = -np.log(p) if target_one else -np.log1p(-p)
        return np.minimum(term, 100.0).mean()
    return (bce_mean(l1_pos, True) + bce_mean(l2_pos, True)
            + bce_mean(l1_neg, False) + bce_mean(l2_neg, False))


if __name__ == "__main__":
    key = jax.random.PRNGKey(0)
    k1, k2, k3, k4 = jax.random.split(key, 4)

    # Small shapes consistent with the module: positive-event logits and
    # (more numerous) negative-sample logits at both levels.
    l1_pos = jax.random.normal(k1, (4, 64), jnp.float32)
    l2_pos = jax.random.normal(k2, (4, 64), jnp.float32)
    l1_neg = jax.random.normal(k3, (4, 64, 16), jnp.float32)
    l2_neg = jax.random.normal(k4, (4, 64, 16), jnp.float32)

    loss = jax.block_until_ready(
        two_level_bce_loss(l1_pos, l2_pos, l1_neg, l2_neg))

    ref = _reference(l1_pos, l2_pos, l1_neg, l2_neg)
    np.testing.assert_allclose(float(loss), ref, rtol=1e-5, atol=1e-5)

    print("KERNEL_OK")
</pallas_src>

<mosaic_0001>
module attributes {stable_mosaic.version = 11 : i64} {
  func.func @_fused_kernel(%arg0: i32, %arg1: memref<2x128xf32, #tpu.memory_space<vmem>>, %arg2: memref<2x128xf32, #tpu.memory_space<vmem>>, %arg3: memref<32x128xf32, #tpu.memory_space<vmem>>, %arg4: memref<32x128xf32, #tpu.memory_space<vmem>>, %arg5: memref<8x512xf32, #tpu.memory_space<vmem>>) attributes {dimension_semantics = [#tpu.dimension_semantics<parallel>], iteration_bounds = array<i64: 1>, scalar_prefetch = 0 : i64, scratch_operands = 0 : i64, tpu.core_type = #tpu.core_type<tc>, window_params = [{pipeline_mode = #tpu.pipeline_mode<synchronous>, transform_indices = @transform_0, window_bounds = array<i64: 2, 128>}, {pipeline_mode = #tpu.pipeline_mode<synchronous>, transform_indices = @transform_1, window_bounds = array<i64: 2, 128>}, {pipeline_mode = #tpu.pipeline_mode<synchronous>, transform_indices = @transform_2, window_bounds = array<i64: 32, 128>}, {pipeline_mode = #tpu.pipeline_mode<synchronous>, transform_indices = @transform_3, window_bounds = array<i64: 32, 128>}, {transform_indices = @transform_4, window_bounds = array<i64: 8, 512>}]} {
    %c0 = arith.constant 0 : index
    %c0_0 = arith.constant 0 : index
    %0 = vector.load %arg1[%c0, %c0_0] : memref<2x128xf32, #tpu.memory_space<vmem>>, vector<2x128xf32>
    %cst = arith.constant 0.000000e+00 : f32
    %1 = vector.broadcast %cst : f32 to vector<2x128xf32>
    %2 = arith.subf %1, %0 : vector<2x128xf32>
    %cst_1 = arith.constant 0.000000e+00 : f32
    %3 = vector.broadcast %cst_1 : f32 to vector<2x128xf32>
    %4 = arith.maximumf %2, %3 : vector<2x128xf32>
    %5 = math.absf %2 : vector<2x128xf32>
    %cst_2 = arith.constant 0.000000e+00 : f32
    %6 = vector.broadcast %cst_2 : f32 to vector<2x128xf32>
    %7 = arith.subf %6, %5 : vector<2x128xf32>
    %8 = math.exp %7 : vector<2x128xf32>
    %9 = math.log1p %8 : vector<2x128xf32>
    %10 = arith.addf %4, %9 : vector<2x128xf32>
    %cst_3 = arith.constant 1.000000e+02 : f32
    %11 = vector.broadcast %cst_3 : f32 to vector<2x128xf32>
    %12 = arith.minimumf %10, %11 : vector<2x128xf32>
    %cst_4 = arith.constant dense<0.000000e+00> : vector<128xf32>
    %13 = vector.multi_reduction <add>, %12, %cst_4 [0] : vector<2x128xf32> to vector<128xf32>
    %14 = vector.shape_cast %13 : vector<128xf32> to vector<1x128xf32>
    %15 = tpu.iota {dimensions = array<i32: 0>} : vector<8x128xi32>
    %c0_i32 = arith.constant 0 : i32
    %16 = vector.broadcast %c0_i32 : i32 to vector<8x128xi32>
    %17 = arith.cmpi eq, %15, %16 : vector<8x128xi32>
    %cst_5 = arith.constant 0.000000e+00 : f32
    %18 = vector.shape_cast %14 : vector<1x128xf32> to vector<1x128xf32>
    %19 = vector.broadcast %18 : vector<1x128xf32> to vector<8x128xf32>
    %20 = vector.broadcast %cst_5 : f32 to vector<8x128xf32>
    %21 = arith.select %17, %19, %20 : vector<8x128xi1>, vector<8x128xf32>
    %c0_6 = arith.constant 0 : index
    %c0_7 = arith.constant 0 : index
    %22 = vector.load %arg5[%c0_6, %c0_7] : memref<8x512xf32, #tpu.memory_space<vmem>>, vector<8x128xf32>
    tpu.vector_store %arg5[%c0_6, %c0_7], %21 {strides = array<i32>} : memref<8x512xf32, #tpu.memory_space<vmem>>, vector<8x128xf32>,
    %c0_8 = arith.constant 0 : index
    %c0_9 = arith.constant 0 : index
    %23 = vector.load %arg2[%c0_8, %c0_9] : memref<2x128xf32, #tpu.memory_space<vmem>>, vector<2x128xf32>
    %cst_10 = arith.constant 0.000000e+00 : f32
    %24 = vector.broadcast %cst_10 : f32 to vector<2x128xf32>
    %25 = arith.subf %24, %23 : vector<2x128xf32>
    %cst_11 = arith.constant 0.000000e+00 : f32
    %26 = vector.broadcast %cst_11 : f32 to vector<2x128xf32>
    %27 = arith.maximumf %25, %26 : vector<2x128xf32>
    %28 = math.absf %25 : vector<2x128xf32>
    %cst_12 = arith.constant 0.000000e+00 : f32
    %29 = vector.broadcast %cst_12 : f32 to vector<2x128xf32>
    %30 = arith.subf %29, %28 : vector<2x128xf32>
    %31 = math.exp %30 : vector<2x128xf32>
    %32 = math.log1p %31 : vector<2x128xf32>
    %33 = arith.addf %27, %32 : vector<2x128xf32>
    %cst_13 = arith.constant 1.000000e+02 : f32
    %34 = vector.broadcast %cst_13 : f32 to vector<2x128xf32>
    %35 = arith.minimumf %33, %34 : vector<2x128xf32>
    %cst_14 = arith.constant dense<0.000000e+00> : vector<128xf32>
    %36 = vector.multi_reduction <add>, %35, %cst_14 [0] : vector<2x128xf32> to vector<128xf32>
    %37 = vector.shape_cast %36 : vector<128xf32> to vector<1x128xf32>
    %38 = tpu.iota {dimensions = array<i32: 0>} : vector<8x128xi32>
    %c0_i32_15 = arith.constant 0 : i32
    %39 = vector.broadcast %c0_i32_15 : i32 to vector<8x128xi32>
    %40 = arith.cmpi eq, %38, %39 : vector<8x128xi32>
    %cst_16 = arith.constant 0.000000e+00 : f32
    %41 = vector.shape_cast %37 : vector<1x128xf32> to vector<1x128xf32>
    %42 = vector.broadcast %41 : vector<1x128xf32> to vector<8x128xf32>
    %43 = vector.broadcast %cst_16 : f32 to vector<8x128xf32>
    %44 = arith.select %40, %42, %43 : vector<8x128xi1>, vector<8x128xf32>
    %c0_17 = arith.constant 0 : index
    %c128 = arith.constant 128 : index
    %45 = vector.load %arg5[%c0_17, %c128] : memref<8x512xf32, #tpu.memory_space<vmem>>, vector<8x128xf32>
    tpu.vector_store %arg5[%c0_17, %c128], %44 {strides = array<i32>} : memref<8x512xf32, #tpu.memory_space<vmem>>, vector<8x128xf32>,
    %c0_18 = arith.constant 0 : index
    %c0_19 = arith.constant 0 : index
    %46 = vector.load %arg3[%c0_18, %c0_19] : memref<32x128xf32, #tpu.memory_space<vmem>>, vector<32x128xf32>
    %cst_20 = arith.constant 0.000000e+00 : f32
    %47 = vector.broadcast %cst_20 : f32 to vector<32x128xf32>
    %48 = arith.maximumf %46, %47 : vector<32x128xf32>
    %49 = math.absf %46 : vector<32x128xf32>
    %cst_21 = arith.constant 0.000000e+00 : f32
    %50 = vector.broadcast %cst_21 : f32 to vector<32x128xf32>
    %51 = arith.subf %50, %49 : vector<32x128xf32>
    %52 = math.exp %51 : vector<32x128xf32>
    %53 = math.log1p %52 : vector<32x128xf32>
    %54 = arith.addf %48, %53 : vector<32x128xf32>
    %cst_22 = arith.constant 1.000000e+02 : f32
    %55 = vector.broadcast %cst_22 : f32 to vector<32x128xf32>
    %56 = arith.minimumf %54, %55 : vector<32x128xf32>
    %57 = vector.shape_cast %56 : vector<32x128xf32> to vector<4x8x128xf32>
    %cst_23 = arith.constant dense<0.000000e+00> : vector<8x128xf32>
    %58 = vector.multi_reduction <add>, %57, %cst_23 [0] : vector<4x8x128xf32> to vector<8x128xf32>
    %c0_24 = arith.constant 0 : index
    %c256 = arith.constant 256 : index
    %59 = vector.load %arg5[%c0_24, %c256] : memref<8x512xf32, #tpu.memory_space<vmem>>, vector<8x128xf32>
    tpu.vector_store %arg5[%c0_24, %c256], %58 {strides = array<i32>} : memref<8x512xf32, #tpu.memory_space<vmem>>, vector<8x128xf32>,
    %c0_25 = arith.constant 0 : index
    %c0_26 = arith.constant 0 : index
    %60 = vector.load %arg4[%c0_25, %c0_26] : memref<32x128xf32, #tpu.memory_space<vmem>>, vector<32x128xf32>
    %cst_27 = arith.constant 0.000000e+00 : f32
    %61 = vector.broadcast %cst_27 : f32 to vector<32x128xf32>
    %62 = arith.maximumf %60, %61 : vector<32x128xf32>
    %63 = math.absf %60 : vector<32x128xf32>
    %cst_28 = arith.constant 0.000000e+00 : f32
    %64 = vector.broadcast %cst_28 : f32 to vector<32x128xf32>
    %65 = arith.subf %64, %63 : vector<32x128xf32>
    %66 = math.exp %65 : vector<32x128xf32>
    %67 = math.log1p %66 : vector<32x128xf32>
    %68 = arith.addf %62, %67 : vector<32x128xf32>
    %cst_29 = arith.constant 1.000000e+02 : f32
    %69 = vector.broadcast %cst_29 : f32 to vector<32x128xf32>
    %70 = arith.minimumf %68, %69 : vector<32x128xf32>
    %71 = vector.shape_cast %70 : vector<32x128xf32> to vector<4x8x128xf32>
    %cst_30 = arith.constant dense<0.000000e+00> : vector<8x128xf32>
    %72 = vector.multi_reduction <add>, %71, %cst_30 [0] : vector<4x8x128xf32> to vector<8x128xf32>
    %c0_31 = arith.constant 0 : index
    %c384 = arith.constant 384 : index
    %73 = vector.load %arg5[%c0_31, %c384] : memref<8x512xf32, #tpu.memory_space<vmem>>, vector<8x128xf32>
    tpu.vector_store %arg5[%c0_31, %c384], %72 {strides = array<i32>} : memref<8x512xf32, #tpu.memory_space<vmem>>, vector<8x128xf32>,
    return
  }
  func.func @transform_0(%arg0: i32) -> (i32, i32) {
    %c0_i32 = arith.constant 0 : i32
    %c0_i32_0 = arith.constant 0 : i32
    %c0_i32_1 = arith.constant 0 : i32
    return %c0_i32, %c0_i32_0 : i32, i32
  }
  func.func @transform_1(%arg0: i32) -> (i32, i32) {
    %c0_i32 = arith.constant 0 : i32
    %c0_i32_0 = arith.constant 0 : i32
    %c0_i32_1 = arith.constant 0 : i32
    return %c0_i32, %c0_i32_0 : i32, i32
  }
  func.func @transform_2(%arg0: i32) -> (i32, i32) {
    %c0_i32 = arith.constant 0 : i32
    %c0_i32_0 = arith.constant 0 : i32
    %c0_i32_1 = arith.constant 0 : i32
    return %c0_i32, %c0_i32_0 : i32, i32
  }
  func.func @transform_3(%arg0: i32) -> (i32, i32) {
    %c0_i32 = arith.constant 0 : i32
    %c0_i32_0 = arith.constant 0 : i32
    %c0_i32_1 = arith.constant 0 : i32
    return %c0_i32, %c0_i32_0 : i32, i32
  }
  func.func @transform_4(%arg0: i32) -> (i32, i32) {
    %c0_i32 = arith.constant 0 : i32
    %c0_i32_0 = arith.constant 0 : i32
    return %arg0, %c0_i32 : i32, i32
  }
}

</mosaic_0001>

<bundles_post_ra>
// kernel: two_level_bce_loss.1
= control target key start
LH: loop header
LB: loop body
LE: loop exit
PB: predicated region body
PF: predicated region fallthrough
CT: control target
= control target key end

     0   :  { %v43_v45 = vlaneseq  ;;  %vm35_vm3 = vcmask 1041408   ;;  %s437_s0 = inlined_call_operand.vmem [shape: f32[2,128], index: 0, kind: input, shape index: {}]   ;;  %s438_s1 = inlined_call_operand.vmem [shape: f32[2,128], index: 1, kind: input, shape index: {}]   ;;  %s439_s2 = inlined_call_operand.vmem [shape: f32[32,128], index: 2, kind: input, shape index: {}]   ;;  %s440_s3 = inlined_call_operand.vmem [shape: f32[32,128], index: 3, kind: input, shape index: {}]   ;;  %s441_s4 = inlined_call_operand.vmem [shape: f32[8,512], index: 4, kind: output, shape index: {}]  }
   0x1   :  { %v17_v0 = vld [vmem:[%s437_s0] sm:$0x3]  ;;  %v302_v5 = vld [vmem:[%s439_s2 + $0x8] sm:$0xff]  ;;  %v307_v6 = vld [vmem:[%s439_s2 + $0x10] sm:$0xff] }
   0x2   :  { %v48_v1 = vld [vmem:[%s438_s1] sm:$0x3]  ;;  %v18_v3 = vsub.f32 0.0, %v17_v0  ;;  %v312_v7 = vld [vmem:[%s439_s2 + $0x18] sm:$0xff]  ;;  %v84_v9 = vand.u32 2147483647, %v302_v5 }
   0x3   :  { %v297_v2 = vld [vmem:[%s439_s2] sm:$0xff]  ;;  %v49_v4 = vsub.f32 0.0, %v48_v1  ;;  %v85_v10 = vand.u32 2147483647, %v307_v6  ;;  %v86_v13 = vand.u32 2147483647, %v312_v7 }
   0x4   :  { %v83_v8 = vand.u32 2147483647, %v297_v2  ;;  %v20_v11 = vand.u32 2147483647, %v18_v3  ;;  %v88_v17 = vsub.f32 0.0, %v84_v9  ;;  %v321_v23 = vld [vmem:[%s440_s3] sm:$0xff] }
   0x5   :  { %v51_v12 = vand.u32 2147483647, %v49_v4  ;;  %v89_v18 = vsub.f32 0.0, %v85_v10  ;;  %v90_v19 = vsub.f32 0.0, %v86_v13  ;;  %v326_v24 = vld [vmem:[%s440_s3 + $0x8] sm:$0xff]  ;;  %v331_v27 = vld [vmem:[%s440_s3 + $0x10] sm:$0xff] }
   0x6   :  { %v87_v14 = vsub.f32 0.0, %v83_v8  ;;  %v21_v15 = vsub.f32 0.0, %v20_v11  ;;  %v93_v25 = vmul.f32 1.442695, %v88_v17  ;;  %v336_v28 = vld [vmem:[%s440_s3 + $0x18] sm:$0xff]  ;;  %v338_v29 = vmax.f32 %v18_v3, 0.0 }
   0x7   :  { %v52_v16 = vsub.f32 0.0, %v51_v12  ;;  %v95_v26 = vmul.f32 1.442695, %v89_v18  ;;  %v340_v30 = vmax.f32 %v49_v4, 0.0  ;;  %v97_v31 = vmul.f32 1.442695, %v90_v19 }
   0x8   :  { %v91_v20 = vmul.f32 1.442695, %v87_v14  ;;  %v22_v21 = vmul.f32 1.442695, %v21_v15  ;;  %v79_v32 = vmax.f32 %v297_v2, 0.0  ;;  %v80_v35 = vmax.f32 %v302_v5, 0.0 }
   0x9   :  { %v53_v22 = vmul.f32 1.442695, %v52_v16  ;;  %v155_v33 = vand.u32 2147483647, %v321_v23  ;;  %v156_v34 = vand.u32 2147483647, %v326_v24 }
   0xa   :  { %223 = vpow2.f32 %v91_v20  ;;  %v157_v36 = vand.u32 2147483647, %v331_v27  ;;  %v158_v37 = vand.u32 2147483647, %v336_v28  ;;  %v81_v38 = vmax.f32 %v307_v6, 0.0 }
   0xb   :  { %225 = vpow2.f32 %v22_v21  ;;  %v159_v39 = vsub.f32 0.0, %v155_v33  ;;  %v160_v40 = vsub.f32 0.0, %v156_v34  ;;  %v82_v41 = vmax.f32 %v312_v7, 0.0 }
   0xc   :  { %227 = vpow2.f32 %v53_v22  ;;  %v151_v42 = vmax.f32 %v321_v23, 0.0  ;;  %v161_v43 = vsub.f32 0.0, %v157_v36  ;;  %v162_v46 = vsub.f32 0.0, %v158_v37 }
   0xd   :  { %229 = vpow2.f32 %v93_v25  ;;  %v163_v47 = vmul.f32 1.442695, %v159_v39  ;;  %v165_v48 = vmul.f32 1.442695, %v160_v40 }
   0xe   :  { %231 = vpow2.f32 %v95_v26  ;;  %v167_v53 = vmul.f32 1.442695, %v161_v43 }
   0xf   :  { %233 = vpow2.f32 %v97_v31 }
  0x10   :  { %v224_v44 = vpop.eup %223  ;;  %235 = vpow2.f32 %v163_v47 }
  0x11   :  { %v226_v49 = vpop.eup %225  ;;  %v99_v50 = vadd.f32 1.0, %v224_v44  ;;  %v102_v51 = vmul.f32 -0.5, %v224_v44  ;;  %v105_v52 = vand.u32 2147483647, %v224_v44 }
  0x12   :  { %v228_v54 = vpop.eup %227  ;;  %v24_v55 = vadd.f32 1.0, %v226_v49  ;;  %v27_v56 = vmul.f32 -0.5, %v226_v49  ;;  %v30_v57 = vand.u32 2147483647, %v226_v49 }
  0x13   :  { %v230_v58 = vpop.eup %229  ;;  %v55_v59 = vadd.f32 1.0, %v228_v54  ;;  %v58_v60 = vmul.f32 -0.5, %v228_v54  ;;  %v61_v61 = vand.u32 2147483647, %v228_v54  ;;  %237 = vlog2.f32 %v99_v50 }
  0x14   :  { %v232_v62 = vpop.eup %231  ;;  %239 = vlog2.f32 %v24_v55  ;;  %v28_v63 = vadd.f32 1.0, %v27_v56  ;;  %vm351_vm0 = vcmp.lt.f32.partialorder %v30_v57, 0.0004427343  ;;  %v103_v1 = vadd.f32 1.0, %v102_v51 }
  0x15   :  { %v234_v3 = vpop.eup %233  ;;  %241 = vlog2.f32 %v55_v59  ;;  %v59_v4 = vadd.f32 1.0, %v58_v60  ;;  %vm355_vm1 = vcmp.lt.f32.partialorder %v61_v61, 0.0004427343  ;;  %vm359_vm2 = vcmp.lt.f32.partialorder %v105_v52, 0.0004427343 }
  0x16   :  { %v29_v10 = vmul.f32 %v226_v49, %v28_v63  ;;  %v104_v11 = vmul.f32 %v224_v44, %v103_v1  ;;  %v108_v12 = vadd.f32 1.0, %v230_v58  ;;  %v111_v13 = vmul.f32 -0.5, %v230_v58  ;;  %v363_v18 = vpop.eup %235 }
  0x17   :  { %v60_v14 = vmul.f32 %v228_v54, %v59_v4  ;;  %v114_v15 = vand.u32 2147483647, %v230_v58  ;;  %v117_v16 = vadd.f32 1.0, %v232_v62  ;;  %v120_v17 = vmul.f32 -0.5, %v232_v62 }
  0x18   :  { %243 = vlog2.f32 %v108_v12  ;;  %v112_v19 = vadd.f32 1.0, %v111_v13  ;;  %v123_v20 = vand.u32 2147483647, %v232_v62  ;;  %v126_v21 = vadd.f32 1.0, %v234_v3 }
  0x19   :  { %v238_v22 = vpop.eup %237  ;;  %vm365_vm4 = vcmp.lt.f32.partialorder %v114_v15, 0.0004427343  ;;  %245 = vlog2.f32 %v117_v16  ;;  %v121_v26 = vadd.f32 1.0, %v120_v17  ;;  %v129_v31 = vmul.f32 -0.5, %v234_v3 }
  0x1a   :  { %v240_v33 = vpop.eup %239  ;;  %v101_v34 = vmul.f32 0.6931472, %v238_v22  ;;  %v113_v36 = vmul.f32 %v230_v58, %v112_v19  ;;  %vm369_vm5 = vcmp.lt.f32.partialorder %v123_v20, 0.0004427343  ;;  %247 = vlog2.f32 %v126_v21 }
  0x1b   :  { %v242_v39 = vpop.eup %241  ;;  %v26_v40 = vmul.f32 0.6931472, %v240_v33  ;;  %v122_v43 = vmul.f32 %v232_v62, %v121_v26  ;;  %v130_v44 = vadd.f32 1.0, %v129_v31  ;;  %v132_v47 = vand.u32 2147483647, %v234_v3 }
  0x1c   :  { %v57_v49 = vmul.f32 0.6931472, %v242_v39  ;;  %v107_v50 = vsel %vm359_vm2, %v104_v11, %v101_v34  ;;  %249 = vpow2.f32 %v165_v48  ;;  %v169_v51 = vmul.f32 1.442695, %v162_v46 }
  0x1d   :  { %v32_v52 = vsel %vm351_vm0, %v29_v10, %v26_v40  ;;  %v131_v54 = vmul.f32 %v234_v3, %v130_v44  ;;  %vm377_vm6 = vcmp.lt.f32.partialorder %v132_v47, 0.0004427343  ;;  %v135_v56 = vadd.f32 %v107_v50, %v79_v32 }
  0x1e   :  { %v244_v57 = vpop.eup %243  ;;  %v33_v58 = vadd.f32 %v32_v52, %v338_v29  ;;  %v63_v59 = vsel %vm355_vm1, %v60_v14, %v57_v49  ;;  %251 = vpow2.f32 %v167_v53  ;;  %v171_v46 = vadd.f32 1.0, %v363_v18 }
  0x1f   :  { %v246_v48 = vpop.eup %245  ;;  %v64_v60 = vadd.f32 %v63_v59, %v340_v30  ;;  %v110_v61 = vmul.f32 0.6931472, %v244_v57  ;;  %v139_v62 = vmin.f32 %v135_v56, 100.0  ;;  %253 = vpow2.f32 %v169_v51 }
  0x20   :  { %v248_v63 = vpop.eup %247  ;;  %v34_v0 = vmin.f32 %v33_v58, 100.0  ;;  %v119_v1 = vmul.f32 0.6931472, %v246_v48  ;;  %255 = vlog2.f32 %v171_v46  ;;  %v174_v2 = vmul.f32 -0.5, %v363_v18 }
  0x21   :  { %v65_v32 = vmin.f32 %v64_v60, 100.0  ;;  %v116_v29 = vsel %vm365_vm4, %v113_v36, %v110_v61  ;;  %v128_v3 = vmul.f32 0.6931472, %v248_v63  ;;  %v177_v53 = vand.u32 2147483647, %v363_v18 }
  0x22   :  { %v250_v4 = vpop.eup %249  ;;  %v36_v8 = vsel %vm35_vm3, %v34_v0, 0.0  ;;  %v125_v30 = vsel %vm369_vm5, %v122_v43, %v119_v1  ;;  %v136_v9 = vadd.f32 %v116_v29, %v80_v35  ;;  %v175_v10 = vadd.f32 1.0, %v174_v2 }
  0x23   :  { %v37_v11 = vrot.slane %v36_v8, 4  ;;  %v66_v12 = vsel %vm35_vm3, %v65_v32, 0.0  ;;  %v134_v13 = vsel %vm377_vm6, %v131_v54, %v128_v3  ;;  %v137_v14 = vadd.f32 %v125_v30, %v81_v38 }
  0x24   :  { %v252_v15 = vpop.eup %251  ;;  %v44_v16 = vshrl.u32 %v43_v45, 7  ;;  %v67_v17 = vrot.slane %v66_v12, 4  ;;  %v138_v19 = vadd.f32 %v134_v13, %v82_v41  ;;  %v140_v20 = vmin.f32 %v136_v9, 100.0 }
  0x25   :  { %v254_v5 = vpop.eup %253  ;;  %v38_v35 = vadd.f32 %v37_v11, %v36_v8  ;;  %v141_v21 = vmin.f32 %v137_v14, 100.0  ;;  %v176_v22 = vmul.f32 %v363_v18, %v175_v10  ;;  %v180_v25 = vadd.f32 1.0, %v250_v4 }
  0x26   :  { %v256_v26 = vpop.eup %255  ;;  %v68_v31 = vadd.f32 %v67_v17, %v66_v12  ;;  %v142_v33 = vmin.f32 %v138_v19, 100.0  ;;  %v143_v34 = vadd.f32 %v140_v20, %v139_v62  ;;  %v183_v6 = vmul.f32 -0.5, %v250_v4 }
  0x27   :  { %v39_v38 = vrot.slane %v38_v35, 2  ;;  %v173_v36 = vmul.f32 0.6931472, %v256_v26  ;;  %vm406_vm7 = vcmp.lt.f32.partialorder %v177_v53, 0.0004427343  ;;  %257 = vlog2.f32 %v180_v25 }
  0x28   :  { %v69_v7 = vrot.slane %v68_v31, 2  ;;  %v144_v41 = vadd.f32 %v143_v34, %v141_v21  ;;  %v184_v37 = vadd.f32 1.0, %v183_v6  ;;  %v189_v39 = vadd.f32 1.0, %v252_v15 }
  0x29   :  { %v40_v40 = vadd.f32 %v39_v38, %v38_v35  ;;  %v152_v18 = vmax.f32 %v326_v24, 0.0  ;;  %v186_v43 = vand.u32 2147483647, %v250_v4  ;;  %v192_v44 = vmul.f32 -0.5, %v252_v15 }
  0x2a   :  { %v70_v47 = vadd.f32 %v69_v7, %v68_v31  ;;  %v145_v49 = vadd.f32 %v144_v41, %v142_v33  ;;  %v179_v50 = vsel %vm406_vm7, %v176_v22, %v173_v36  ;;  %259 = vlog2.f32 %v189_v39 }
  0x2b   :  { %v41_v51 = vrot.slane %v40_v40, 1  ;;  %vm45_vm8 = vcmp.eq.s32.totalorder %v44_v16, 0  ;;  %v193_v52 = vadd.f32 1.0, %v192_v44  ;;  %v198_v54 = vadd.f32 1.0, %v254_v5 }
  0x2c   :  { %v71_v55 = vrot.slane %v70_v47, 1  ;;  %146 = vst [vmem:[%s441_s4 + $0x10] sm:$0xff] %v145_v49  ;;  %v185_v56 = vmul.f32 %v250_v4, %v184_v37  ;;  %v195_v57 = vand.u32 2147483647, %v252_v15  ;;  %v201_v24 = vmul.f32 -0.5, %v254_v5 }
  0x2d   :  { %v258_v58 = vpop.eup %257  ;;  %v42_v59 = vadd.f32 %v41_v51, %v40_v40  ;;  %vm416_vm9 = vcmp.lt.f32.partialorder %v186_v43, 0.0004427343  ;;  %261 = vlog2.f32 %v198_v54  ;;  %v207_v48 = vadd.f32 %v179_v50, %v151_v42 }
  0x2e   :  { %v72_v60 = vadd.f32 %v71_v55, %v70_v47  ;;  %v182_v61 = vmul.f32 0.6931472, %v258_v58  ;;  %v202_v62 = vadd.f32 1.0, %v201_v24  ;;  %v194_v0 = vmul.f32 %v252_v15, %v193_v52 }
  0x2f   :  { %v46_v63 = vsel %vm45_vm8, %v42_v59, 0.0  ;;  %v204_v1 = vand.u32 2147483647, %v254_v5  ;;  %v153_v29 = vmax.f32 %v331_v27, 0.0  ;;  %vm196_vm10 = vcmp.lt.f32.partialorder %v195_v57, 0.0004427343 }
  0x30   :  { %v260_v2 = vpop.eup %259  ;;  %47 = vst [vmem:[%s441_s4] sm:$0xff] %v46_v63  ;;  %v73_v32 = vsel %vm45_vm8, %v72_v60, 0.0  ;;  %v188_v23 = vsel %vm416_vm9, %v185_v56, %v182_v61  ;;  %v211_v53 = vmin.f32 %v207_v48, 100.0  ;;  %v203_v4 = vmul.f32 %v254_v5, %v202_v62 }
  0x31   :  { %74 = vst [vmem:[%s441_s4 + $0x8] sm:$0xff] %v73_v32  ;;  %v191_v42 = vmul.f32 0.6931472, %v260_v2  ;;  %v208_v3 = vadd.f32 %v188_v23, %v152_v18  ;;  %v154_v30 = vmax.f32 %v336_v28, 0.0  ;;  %vm205_vm11 = vcmp.lt.f32.partialorder %v204_v1, 0.0004427343 }
  0x33   :  { %v262_v8 = vpop.eup %261  ;;  %v197_v9 = vsel %vm196_vm10, %v194_v0, %v191_v42  ;;  %v212_v10 = vmin.f32 %v208_v3, 100.0 }
  0x34   :  { %v200_v11 = vmul.f32 0.6931472, %v262_v8  ;;  %v209_v27 = vadd.f32 %v197_v9, %v153_v29 }
  0x35   :  { %v215_v12 = vadd.f32 %v212_v10, %v211_v53 }
  0x36   :  { %v206_v13 = vsel %vm205_vm11, %v203_v4, %v200_v11  ;;  %v213_v14 = vmin.f32 %v209_v27, 100.0 }
  0x37   :  { %v210_v15 = vadd.f32 %v206_v13, %v154_v30 }
  0x38   :  { %v216_v16 = vadd.f32 %v215_v12, %v213_v14 }
  0x39   :  { %v214_v17 = vmin.f32 %v210_v15, 100.0 }
  0x3b   :  { %v217_v19 = vadd.f32 %v216_v16, %v214_v17 }
  0x3d   :  { %218 = vst [vmem:[%s441_s4 + $0x18] sm:$0xff] %v217_v19 }

</bundles_post_ra>
